<compile_context>
chip_gen: v7x
topology: tpu7x:2x2x1
jax: 0.10.0
libtpu: 0.0.40
codegen_flags: <defaults>
</compile_context>

<pallas_src>
import jax
import jax.numpy as jnp
from jax import lax
from jax.experimental import pallas as pl
from jax.experimental.pallas import tpu as pltpu


def _round_up(x, m):
    return (x + m - 1) // m * m


def _sigmoid_block_kernel(x_ref, w_ref, o_ref, acc_ref):
    # x_ref: (tm, tk); w_ref: (tn, tk)  -- PyTorch (out_f, in_f) layout, no host transpose.
    @pl.when(pl.program_id(2) == 0)
    def _():
        acc_ref[...] = jnp.zeros_like(acc_ref)

    # MXU "NT" matmul: contracts dim 1 of x with dim 1 of w -> (tm, tn), f32 accumulate.
    acc_ref[...] += lax.dot_general(
        x_ref[...],
        w_ref[...],
        dimension_numbers=(((1,), (1,)), ((), ())),
        preferred_element_type=jnp.float32,
    )

    @pl.when(pl.program_id(2) == pl.num_programs(2) - 1)
    def _():
        acc = acc_ref[...]
        # sigmoid(z) = 1 / (1 + exp(-z)); exp and approx reciprocal both land on the EUP.
        sig = pl.reciprocal(1.0 + jnp.exp(-acc), approx=True)
        o_ref[...] = sig.astype(o_ref.dtype)


def sigmoid_block(x, weight, *, tm=128, tn=128, tk=256):
    """Forward of SigmoidBlock: sigmoid(x @ weight.T).

    x:      (B, input_size)
    weight: (output_size, input_size)  -- PyTorch nn.Linear layout, used as-is.
    Works for f32 (all chips) or bf16 inputs (recommended on v6e/v7x).
    """
    B, in_f = x.shape
    out_f, in_f_w = weight.shape
    assert in_f == in_f_w, "weight must be (output_size, input_size)"

    # Clamp tiles to the (padded) problem so tiny shapes stay cheap, while keeping
    # lane dims >= 128 and sublane dims bf16-safe (multiples of 16).
    tm = min(tm, _round_up(B, 16))
    tn = min(tn, _round_up(out_f, 128))
    tk = min(tk, _round_up(in_f, 128))

    Mp, Np, Kp = _round_up(B, tm), _round_up(out_f, tn), _round_up(in_f, tk)

    # Zero-pad to tile multiples (zeros along K contribute nothing to the dot;
    # padded M/N rows/cols are sliced off afterwards).
    xp = x if (Mp == B and Kp == in_f) else jnp.pad(x, ((0, Mp - B), (0, Kp - in_f)))
    wp = (
        weight
        if (Np == out_f and Kp == in_f)
        else jnp.pad(weight, ((0, Np - out_f), (0, Kp - in_f)))
    )

    grid = (Mp // tm, Np // tn, Kp // tk)

    in_bytes = xp.dtype.itemsize
    out_bytes = x.dtype.itemsize
    # 2x double-buffered input tiles + 2x output tile + f32 accumulator, with headroom;
    # capped at 32 MiB so it stays safe under v7x's 64 MiB physical VMEM.
    vmem_needed = 2 * (tm * tk + tn * tk) * in_bytes + 2 * tm * tn * out_bytes + tm * tn * 4
    vmem_limit = int(min(32 * 1024 * 1024, max(4 * 1024 * 1024, 2 * vmem_needed)))

    cost = pl.CostEstimate(
        flops=2 * Mp * Np * Kp,
        transcendentals=Mp * Np,
        bytes_accessed=(Mp * Kp + Np * Kp) * in_bytes + Mp * Np * out_bytes,
    )

    out = pl.pallas_call(
        _sigmoid_block_kernel,
        out_shape=jax.ShapeDtypeStruct((Mp, Np), x.dtype),
        grid_spec=pltpu.PrefetchScalarGridSpec(
            num_scalar_prefetch=0,
            grid=grid,
            in_specs=[
                pl.BlockSpec((tm, tk), lambda i, j, k: (i, k)),  # x tile
                pl.BlockSpec((tn, tk), lambda i, j, k: (j, k)),  # weight tile (out, in)
            ],
            out_specs=pl.BlockSpec((tm, tn), lambda i, j, k: (i, j)),
            scratch_shapes=[pltpu.VMEM((tm, tn), jnp.float32)],
        ),
        compiler_params=pltpu.CompilerParams(
            dimension_semantics=("parallel", "parallel", "arbitrary"),
            vmem_limit_bytes=vmem_limit,
        ),
        cost_estimate=cost,
    )(xp, wp)

    if Mp != B or Np != out_f:
        out = out[:B, :out_f]
    return out


if __name__ == "__main__":
    key = jax.random.PRNGKey(0)
    k_x, k_w = jax.random.split(key)

    # Small but tiling-friendly shapes: grid = (2, 2, 2), lane-dense 128-wide blocks.
    batch = 256
    input_size = 512
    output_size = 256

    x = jax.random.normal(k_x, (batch, input_size), dtype=jnp.float32)
    # Deterministic init mimicking nn.Linear default (uniform in +-1/sqrt(in)).
    bound = 1.0 / (input_size ** 0.5)
    weight = jax.random.uniform(
        k_w, (output_size, input_size), dtype=jnp.float32, minval=-bound, maxval=bound
    )

    out = sigmoid_block(x, weight)
    out = jax.block_until_ready(out)

    # Sanity check against plain-JAX reference (approx reciprocal -> ~1e-3 tolerance).
    ref = jax.nn.sigmoid(x @ weight.T)
    assert out.shape == (batch, output_size)
    assert jnp.allclose(out, ref, atol=2e-3, rtol=2e-3)

    print("KERNEL_OK")
</pallas_src>

<mosaic_0001>
module attributes {stable_mosaic.version = 11 : i64} {
  func.func @_sigmoid_block_kernel(%arg0: i32, %arg1: i32, %arg2: i32, %arg3: memref<128x256xf32, #tpu.memory_space<vmem>>, %arg4: memref<128x256xf32, #tpu.memory_space<vmem>>, %arg5: memref<128x128xf32, #tpu.memory_space<vmem>>, %arg6: memref<128x128xf32, #tpu.memory_space<vmem>>) attributes {dimension_semantics = [#tpu.dimension_semantics<parallel>, #tpu.dimension_semantics<parallel>, #tpu.dimension_semantics<arbitrary>], iteration_bounds = array<i64: 2, 2, 2>, scalar_prefetch = 0 : i64, scratch_operands = 1 : i64, tpu.core_type = #tpu.core_type<tc>, window_params = [{transform_indices = @transform_0, window_bounds = array<i64: 128, 256>}, {transform_indices = @transform_1, window_bounds = array<i64: 128, 256>}, {transform_indices = @transform_2, window_bounds = array<i64: 128, 128>}]} {
    %c0_i32 = arith.constant 0 : i32
    %0 = arith.cmpi eq, %arg2, %c0_i32 : i32
    %1 = arith.extui %0 : i1 to i32
    %c0_i32_0 = arith.constant 0 : i32
    %2 = arith.cmpi ne, %1, %c0_i32_0 : i32
    scf.if %2 {
      %cst_9 = arith.constant 0.000000e+00 : f32
      %12 = vector.broadcast %cst_9 : f32 to vector<128x128xf32>
      %c0_10 = arith.constant 0 : index
      %c0_11 = arith.constant 0 : index
      %13 = vector.load %arg6[%c0_10, %c0_11] : memref<128x128xf32, #tpu.memory_space<vmem>>, vector<128x128xf32>
      tpu.vector_store %arg6[%c0_10, %c0_11], %12 {strides = array<i32>} : memref<128x128xf32, #tpu.memory_space<vmem>>, vector<128x128xf32>,
    } else {
    }
    %c0 = arith.constant 0 : index
    %c0_1 = arith.constant 0 : index
    %3 = vector.load %arg6[%c0, %c0_1] : memref<128x128xf32, #tpu.memory_space<vmem>>, vector<128x128xf32>
    %c0_2 = arith.constant 0 : index
    %c0_3 = arith.constant 0 : index
    %4 = vector.load %arg3[%c0_2, %c0_3] : memref<128x256xf32, #tpu.memory_space<vmem>>, vector<128x256xf32>
    %c0_4 = arith.constant 0 : index
    %c0_5 = arith.constant 0 : index
    %5 = vector.load %arg4[%c0_4, %c0_5] : memref<128x256xf32, #tpu.memory_space<vmem>>, vector<128x256xf32>
    %cst = arith.constant dense<0.000000e+00> : vector<128x128xf32>
    %6 = tpu.matmul %4, %5, %cst {dimension_numbers = #tpu.dot_dimension_numbers<[1], [1], [0], [0], [0, 0, 1, 0], [], []>} : vector<128x256xf32>, vector<128x256xf32>, vector<128x128xf32> -> vector<128x128xf32>
    %7 = arith.addf %3, %6 : vector<128x128xf32>
    %c0_6 = arith.constant 0 : index
    %c0_7 = arith.constant 0 : index
    %8 = vector.load %arg6[%c0_6, %c0_7] : memref<128x128xf32, #tpu.memory_space<vmem>>, vector<128x128xf32>
    tpu.vector_store %arg6[%c0_6, %c0_7], %7 {strides = array<i32>} : memref<128x128xf32, #tpu.memory_space<vmem>>, vector<128x128xf32>,
    %c1_i32 = arith.constant 1 : i32
    %9 = arith.cmpi eq, %arg2, %c1_i32 : i32
    %10 = arith.extui %9 : i1 to i32
    %c0_i32_8 = arith.constant 0 : i32
    %11 = arith.cmpi ne, %10, %c0_i32_8 : i32
    scf.if %11 {
      %c0_9 = arith.constant 0 : index
      %c0_10 = arith.constant 0 : index
      %12 = vector.load %arg6[%c0_9, %c0_10] : memref<128x128xf32, #tpu.memory_space<vmem>>, vector<128x128xf32>
      %cst_11 = arith.constant 0.000000e+00 : f32
      %13 = vector.broadcast %cst_11 : f32 to vector<128x128xf32>
      %14 = arith.subf %13, %12 : vector<128x128xf32>
      %15 = math.exp %14 : vector<128x128xf32>
      %cst_12 = arith.constant 1.000000e+00 : f32
      %16 = vector.broadcast %cst_12 : f32 to vector<128x128xf32>
      %17 = arith.addf %16, %15 : vector<128x128xf32>
      %18 = tpu.reciprocal %17 {approx = true} : vector<128x128xf32> -> vector<128x128xf32>
      %c0_13 = arith.constant 0 : index
      %c0_14 = arith.constant 0 : index
      %19 = vector.load %arg5[%c0_13, %c0_14] : memref<128x128xf32, #tpu.memory_space<vmem>>, vector<128x128xf32>
      tpu.vector_store %arg5[%c0_13, %c0_14], %18 {strides = array<i32>} : memref<128x128xf32, #tpu.memory_space<vmem>>, vector<128x128xf32>,
    } else {
    }
    return
  }
  func.func @transform_0(%arg0: i32, %arg1: i32, %arg2: i32) -> (i32, i32) {
    %c0_i32 = arith.constant 0 : i32
    return %arg0, %arg2 : i32, i32
  }
  func.func @transform_1(%arg0: i32, %arg1: i32, %arg2: i32) -> (i32, i32) {
    %c0_i32 = arith.constant 0 : i32
    return %arg1, %arg2 : i32, i32
  }
  func.func @transform_2(%arg0: i32, %arg1: i32, %arg2: i32) -> (i32, i32) {
    %c0_i32 = arith.constant 0 : i32
    return %arg0, %arg1 : i32, i32
  }
}

</mosaic_0001>

<bundles_post_ra>
// kernel: tpu_custom_call.1
= control target key start
LH: loop header
LB: loop body
LE: loop exit
PB: predicated region body
PF: predicated region fallthrough
CT: control target
= control target key end

     0   :  { %s1802_s0 = inlined_call_operand.hbm [shape: f32[256,512], index: 0, kind: input, shape index: {}]   ;;  %s1803_s1 = inlined_call_operand.hbm [shape: f32[256,512], index: 1, kind: input, shape index: {}]   ;;  %s1804_s2 = inlined_call_operand.hbm [shape: f32[256,256], index: 2, kind: output, shape index: {}]  }
   0x1   :  { %1822 = sst [smem:[#allocation20_spill]] %s1802_s0 }
   0x2   :  { %1823 = sst [smem:[#allocation21_spill]] %s1804_s2 }
   0x3   :  { %7 = vsyncpa [#allocation4], 0 }
   0x4   :  { %9 = vsyncpa [#allocation4 + $0x1], 0 }
   0x5   :  { %10 = vsyncpa [#allocation7], 0 }
   0x6   :  { %12 = vsyncpa [#allocation7 + $0x1], 0 }
   0x7   :  { %13 = vsyncpa [#allocation5], 0 }
   0x8   :  { %15 = vsyncpa [#allocation5 + $0x1], 0  ;;  %s1316_s9 = smov 0   ;;  %s1318_s10 = smov 0  }
   0x9   :  { %s1320_s11 = smov 0   ;;  %s1322_s12 = smov 0  }
   0xa   :  { %s1324_s13 = smov 0   ;;  %s1326_s14 = smov 0  }
   0xb   :  { %s1328_s15 = smov 0   ;;  %s1330_s16 = smov 0  }
   0xc   :  { %s1332_s17 = smov 0   ;;  %s1334_s18 = smov 0  }
   0xd   :  { %s1336_s19 = smov 0   ;;  %s1338_s20 = smov 0  }
   0xe   :  { %s1340_s21 = smov 0   ;;  %s1342_s22 = smov 0  }
   0xf   :  { %s1344_s23 = smov 0   ;;  %s1346_s24 = smov 0  }
  0x10 LB: > { %1824 = sst [smem:[#allocation12_spill]] %s1265_s18  ;;  %s768_s25 = sadd.s32 4294967295, %s1289_s24   ;;  %s1289_s24 = sphi %s1346_s24, %s21_s24   ;;  %s1285_s23 = sphi %s1344_s23, %s1871_s23   ;;  %s1281_s22 = sphi %s1342_s22, %s1885_s22   ;;  %s1277_s21 = sphi %s1340_s21, %s1884_s21   ;;  %s1273_s20 = sphi %s1338_s20, %s1883_s20   ;;  %s1269_s19 = sphi %s1336_s19, %s1882_s19   ;;  %s1265_s18 = sphi %s1334_s18, %s1881_s18   ;;  %s1261_s17 = sphi %s1332_s17, %s1880_s17   ;;  %s1257_s16 = sphi %s1330_s16, %s1879_s16   ;;  %s1253_s15 = sphi %s1328_s15, %s1878_s15   ;;  %s1249_s14 = sphi %s1326_s14, %s1877_s14   ;;  %s1245_s13 = sphi %s1324_s13, %s1876_s13   ;;  %s1241_s12 = sphi %s1322_s12, %s1875_s12   ;;  %s1237_s11 = sphi %s1320_s11, %s1874_s11   ;;  %s1233_s10 = sphi %s1318_s10, %s1873_s10   ;;  %s1229_s9 = sphi %s1316_s9, %s1872_s9  }
  0x11   : > { %1825 = sst [smem:[#allocation13_spill]] %s1269_s19  ;;  %s33_s26 = sadd.s32 1, %s1277_s21 }
  0x12   : > { %1826 = sst [smem:[#allocation14_spill]] %s1273_s20  ;;  %p1396_p0 = scmp.ge.s32.totalorder %s33_s26, 2 }
  0x13   : > { %1827 = sst [smem:[#allocation15_spill]] %s1285_s23  ;;  %p56_p1 = scmp.ne.s32.totalorder %s1261_s17, %s1257_s16 }
  0x14   : > { %s1887_s26 = smov (%p1396_p0, %s33_s26), 0  ;;  %p1810_p2 = scmp.eq.s32.totalorder %s1289_s24, 0 }
  0x15   : > { %1829 = sst [smem:[#allocation16_spill]] %s1887_s26  ;;  %p62_p3 = scmp.ne.s32.totalorder %s1257_s16, %s1253_s15 }
  0x16   : > { %s1412_s30 = ssub.s32 %s1277_s21, %s1887_s26  ;;  %p1414_p4 = scmp.eq.s32.totalorder %s768_s25, 0 }
  0x17   : > { %p1420_p5 = por %p1810_p2, %p56_p1  ;;  %p1424_p6 = scmp.eq.s32.totalorder %s768_s25, 7 }
  0x18   : > { %s1830_s3 = scalar_select %p1414_p4, 1, 0 }
  0x19   : > { %s1832_s5 = scalar_select %p1424_p6, 1, 0 }
  0x1a   : > { %p1430_p7 = por %p1414_p4, %p62_p3  ;;  %p1809_p8 = scmp.lt.s32.totalorder %s1289_s24, 8 }
  0x1b   : > { %s142_s7 = sand.u32 1, %s1261_s17   ;;  %s1816_s15 = sshll.u32 %s1277_s21, 1 }
  0x1c   : > { %s1833_s6 = scalar_select %p1430_p7, 1, 0 }
  0x1d   : > { %s772_s8 = sshll.u32 %s142_s7, 8  ;;  %s794_s29 = sshll.u32 %s1285_s23, 6 }
  0x1e   : > { %1834 = sst [smem:[#allocation17_spill]] %s1833_s6  ;;  %s146_s28 = scalar_lea.vmem [#allocation3], %s772_s8 }
  0x1f   : > { %s156_s26 = sshll.u32 %s146_s28, 4  ;;  %s153_s2 = sadd.s32 %s794_s29, %s1816_s15  ;;  %s1440_s26 = int_to_ptr.vmem [resolvable:$true] %s156_s26 }
  0x20   : > { %s776_s25 = sshll.u32 %s153_s2, 7  ;;  %p1446_p9 = pnand %p1809_p8, %p1420_p5 }
  0x21   : > { %s1836_s0 = sld [smem:[#allocation20_spill]]  ;;  %s1456_s28 = scalar_lea.sflag [#allocation4], %s142_s7 }
  0x22   : > { %p1065_p12 = pneg %p1446_p9 }
  0x27   : > { %s1453_s6 = scalar_lea.hbm %s1836_s0, %s776_s25  ;;  %s1068_s29 = scalar_lea.hbm %s1836_s0, 16384 }
  0x28   : > { %s1063_s2 = scalar_lea.hbm %s1453_s6, 4096  ;;  %p1069_p3 = scmp.lt.u32.totalorder %s1453_s6, %s1836_s0 }
  0x29   : > { %p1064_p11 = scmp.ne.s32.totalorder %s1453_s6, %s1063_s2  ;;  %p1070_p5 = scmp.lt.u32.totalorder %s1068_s29, %s1063_s2 }
  0x2a   : > { %p1072_p2 = scmp.lt.u32.totalorder %s1063_s2, %s1453_s6 }
  0x2b   : > { %p1066_p13 = pnand %p1065_p12, %p1064_p11  ;;  %p1071_p8 = por %p1070_p5, %p1069_p3 }
  0x2d   : > { %p1067_p1 = pneg %p1066_p13  ;;  %p1073_p10 = por %p1072_p2, %p1071_p8 }
  0x2f   : > { %p1074_p7 = pnand %p1073_p10, %p1067_p1 }
  0x31   : > { %1077 = shalt.err (!%p1074_p7)
}
  0x32   : > { %s1078_s7 = scalar_lea.vmem %s1440_s26, 4096  ;;  %s1291_s25 = smov [#allocation3]  }
  0x33   : > { %p1079_p11 = scmp.ne.s32.totalorder %s1440_s26, %s1078_s7  ;;  %s1083_s18 = sshll.u32 %s1291_s25, 4  ;;  %s1084_s18 = int_to_ptr.vmem [resolvable:$false] %s1083_s18 }
  0x34   : > { %s1085_s20 = scalar_lea.vmem %s1084_s18, 8192  ;;  %p1086_p4 = scmp.lt.s32.totalorder %s1440_s26, %s1084_s18 }
  0x35   : > { %p1081_p13 = pnand %p1079_p11, %p1065_p12  ;;  %p1087_p3 = scmp.lt.s32.totalorder %s1085_s20, %s1078_s7 }
  0x37   : > { %p1082_p6 = pneg %p1081_p13  ;;  %p1088_p5 = por %p1087_p3, %p1086_p4 }
  0x39   : > { %p1089_p2 = pnand %p1088_p5, %p1082_p6 }
  0x3b   : > { %1092 = shalt.err (!%p1089_p2)
}
  0x3c   : > { %s1813_s2 = smov 512   ;;  %s1814_s29 = smov 256  }
  0x3d   : > { %s1815_s4 = smov 16   ;;  %p188_p4 = scmp.lt.s32.totalorder %s1289_s24, 9 }
  0x3e   : > { %854 = dma.hbm_to_vmem [thread:$0]  (!%p1446_p9), %s1453_s6, 4096, %s1440_s26, %s1456_s28, %s1813_s2, %s1814_s29, %s1815_s4  }
  0x3f   : > { %p1837_p6 = scmp.ge.s32.totalorder %s1289_s24, 1  ;;  %s769_s7 = sadd.s32 4294967294, %s1289_s24  }
  0x40   : > { %s36_s25 = sadd.s32 1, %s1281_s22  ;;  %s77_s19 = sadd.s32 1, %s1249_s14 }
  0x41   : > { %p1490_p7 = pnand %p1837_p6, %p188_p4  ;;  %s1889_s25 = smov (!%p1396_p0, %s36_s25), %s1281_s22 }
  0x42   : > { %p84_p8 = scmp.ne.s32.totalorder %s1249_s14, %s1245_s13  ;;  %p38_p10 = scmp.ge.s32.totalorder %s1889_s25, 2 }
  0x43   : > { %p90_p9 = scmp.ne.s32.totalorder %s1245_s13, %s1241_s12  ;;  %p1839_p12 = scmp.eq.s32.totalorder %s1289_s24, 0 }
  0x44   : > { %s105_s6 = sadd.s32 1, %s1237_s11  ;;  %s1891_s25 = smov (%p38_p10, %s1889_s25), 0 }
  0x45   : > { %p1506_p1 = por %p84_p8, %p1839_p12  ;;  %1841 = sst [smem:[#allocation18_spill]] %s1891_s25 }
  0x46   : > { %s1842_s28 = sadd.s32 1, %s1285_s23  ;;  %s72_s27 = ssub.s32 %s1281_s22, %s1891_s25 }
  0x47   : > { %s1893_s28 = smov (!%p38_p10, %s1842_s28), %s1285_s23  ;;  %p1843_p0 = scmp.ne.s32.totalorder %s1830_s3, 0 }
  0x48   : > { %p42_p13 = scmp.ge.s32.totalorder %s1893_s28, 2  ;;  %s74_s12 = sor.u32 %s72_s27, %s1412_s30 }
  0x49   : > { %p1520_p11 = por %p90_p9, %p1843_p0  ;;  %p75_p3 = scmp.eq.s32.totalorder %s74_s12, 0 }
  0x4a   : > { %p115_p5 = scmp.ne.s32.totalorder %s1237_s11, %s1233_s10  ;;  %s1895_s28 = smov (%p42_p13, %s1893_s28), 0 }
  0x4b   : > { %s1844_s18 = scalar_select %p1520_p11, 1, 0 }
  0x4c   : > { %1845 = sst [smem:[#allocation19_spill]] %s1895_s28  ;;  %s44_s3 = ssub.s32 %s1285_s23, %s1895_s28 }
  0x4d   : > { %s1530_s20 = scalar_select %p75_p3, %s1249_s14, %s77_s19  }
  0x4e   : > { %p1846_p2 = scmp.ne.s32.totalorder %s1832_s5, 0  ;;  %s46_s29 = sor.u32 %s1412_s30, %s44_s3 }
  0x4f   : > { %s102_s4 = sor.u32 %s72_s27, %s44_s3  ;;  %p47_p6 = scmp.eq.s32.totalorder %s46_s29, 0 }
  0x50   : > { %p1536_p4 = por %p1846_p2, %p115_p5  ;;  %p103_p8 = scmp.eq.s32.totalorder %s102_s4, 0 }
  0x51   : > { %p121_p10 = scmp.ne.s32.totalorder %s1233_s10, %s1229_s9  ;;  %p122_p9 = scmp.eq.s32.totalorder %s769_s7, 7 }
  0x52   : > { %s1847_s2 = scalar_select %p1536_p4, 1, 0 }
  0x53   : > { %s1848_s12 = sadd.s32 1, %s1261_s17  ;;  %p1551_p12 = por %p122_p9, %p121_p10 }
  0x54   : > { %s1546_s15 = scalar_select %p47_p6, %s1261_s17, %s1848_s12  }
  0x55   : > { %s1549_s0 = scalar_select %p103_p8, %s1237_s11, %s105_s6  }
  0x56   : > { %s1849_s19 = scalar_select %p1551_p12, 1, 0 }
  0x57   : > { %s166_s5 = sand.u32 1, %s1249_s14   ;;  %s795_s25 = sshll.u32 %s1281_s22, 6 }
  0x58   : > { %s777_s28 = sshll.u32 %s166_s5, 8  ;;  %s1850_s30 = sshll.u32 %s1277_s21, 1 }
  0x59   : > { %s177_s27 = sadd.s32 %s795_s25, %s1850_s30  ;;  %s170_s29 = scalar_lea.vmem [#allocation6], %s777_s28 }
  0x5a   : > { %s180_s3 = sshll.u32 %s170_s29, 4  ;;  %s781_s23 = sshll.u32 %s177_s27, 7  ;;  %s1559_s3 = int_to_ptr.vmem [resolvable:$true] %s180_s3 }
  0x5b   : > { %s1564_s12 = scalar_lea.hbm %s1803_s1, %s781_s23  ;;  %p1851_p0 = scmp.lt.s32.totalorder %s1289_s24, 8 }
  0x5c   : > { %s1574_s25 = scalar_lea.sflag [#allocation7], %s166_s5  ;;  %s1093_s28 = scalar_lea.hbm %s1564_s12, 4096 }
  0x5d   : > { %p1570_p13 = pnand %p1851_p0, %p1506_p1  ;;  %p1094_p3 = scmp.ne.s32.totalorder %s1564_s12, %s1093_s28 }
  0x5e   : > { %s1098_s30 = scalar_lea.hbm %s1803_s1, 16384  ;;  %p1099_p1 = scmp.lt.u32.totalorder %s1564_s12, %s1803_s1 }
  0x5f   : > { %p1095_p5 = pneg %p1570_p13  ;;  %p1100_p8 = scmp.lt.u32.totalorder %s1098_s30, %s1093_s28 }
  0x60   : > { %p1102_p9 = scmp.lt.u32.totalorder %s1093_s28, %s1564_s12 }
  0x61   : > { %p1096_p2 = pnand %p1095_p5, %p1094_p3  ;;  %p1101_p10 = por %p1100_p8, %p1099_p1 }
  0x63   : > { %p1097_p6 = pneg %p1096_p2  ;;  %p1103_p0 = por %p1102_p9, %p1101_p10 }
  0x65   : > { %p1104_p12 = pnand %p1103_p0, %p1097_p6 }
  0x67   : > { %1107 = shalt.err (!%p1104_p12)
}
  0x68   : > { %s1108_s5 = scalar_lea.vmem %s1559_s3, 4096  ;;  %s1295_s4 = smov [#allocation6]  }
  0x69   : > { %p1109_p3 = scmp.ne.s32.totalorder %s1559_s3, %s1108_s5  ;;  %s1113_s7 = sshll.u32 %s1295_s4, 4  ;;  %s1114_s7 = int_to_ptr.vmem [resolvable:$false] %s1113_s7 }
  0x6a   : > { %s1115_s23 = scalar_lea.vmem %s1114_s7, 8192  ;;  %p1116_p11 = scmp.lt.s32.totalorder %s1559_s3, %s1114_s7 }
  0x6b   : > { %p1111_p2 = pnand %p1109_p3, %p1095_p5  ;;  %p1117_p1 = scmp.lt.s32.totalorder %s1115_s23, %s1108_s5 }
  0x6d   : > { %p1112_p4 = pneg %p1111_p2  ;;  %p1118_p8 = por %p1117_p1, %p1116_p11 }
  0x6f   : > { %p1119_p10 = pnand %p1118_p8, %p1112_p4 }
  0x71   : > { %1122 = shalt.err (!%p1119_p10)
}
  0x72   : > { %s1853_s28 = smov 16   ;;  %s1854_s26 = smov 256  }
  0x73   : > { %s1855_s30 = smov 512   ;;  %192 = sbr.rel (%p1490_p7) target bundleno = 543 (0x21f), region = 28 }
  0x74   : > { %857 = dma.hbm_to_vmem [thread:$0]  (!%p1570_p13), %s1564_s12, 4096, %s1559_s3, %s1574_s25, %s1855_s30, %s1854_s26, %s1853_s28  }
  0x75   : > { %s1856_s27 = sld [smem:[#allocation17_spill]] (!%p1490_p7)  ;;  %s194_s29 = sand.u32 (!%p1490_p7), 1, %s1257_s16  }
  0x76   : > { %s783_s4 = sshll.u32 (!%p1490_p7), %s194_s29, 8  ;;  %s195_s5 = scalar_lea.sflag (!%p1490_p7), [#allocation4], %s194_s29 }
  0x77   : > { %s1608_s7 = scalar_lea.vmem (!%p1490_p7), [#allocation3], %s783_s4 }
  0x7b   : > { %p1857_p11 = scmp.ne.s32.totalorder %s1856_s27, 0 }
  0x7d   : > { %1216 = dma.done.wait (%p1857_p11), %s195_s5, 4096  }
  0x7e   : > { %1218 = vsyncadd (%p1857_p11), %s195_s5, 4294963200  ;;  %s203_s6 = sand.u32 1, %s1245_s13   ;;  %p1858_p7 = scmp.ne.s32.totalorder %s1844_s18, 0 }
  0x7f   : > { %s784_s23 = sshll.u32 %s203_s6, 8  ;;  %s204_s3 = scalar_lea.sflag [#allocation7], %s203_s6 }
  0x80   : > { %s1615_s12 = scalar_lea.vmem [#allocation6], %s784_s23 }
  0x81   : > { %1220 = dma.done.wait (%p1858_p7), %s204_s3, 4096  }
  0x82   : > { %1222 = vsyncadd (%p1858_p7), %s204_s3, 4294963200  ;;  %s230_s8 = sand.u32 1, %s1233_s10   ;;  %s1859_s26 = sld [smem:[#allocation12_spill]] }
  0x83   : > { %s785_s25 = sshll.u32 %s230_s8, 7 }
  0x84   : > { %s1624_s28 = scalar_lea.vmem [#allocation8], %s785_s25 }
  0x88   : > { %p786_p4 = scmp.ne.s32.totalorder %s1859_s26, 0 }
  0x89   : > { %v1296_v0 = vmov (!%p786_p4), 0.0  }
  0x8a   : > { %241 = sbr.rel (%p786_p4) target bundleno = 146 (0x92), region = 40  ;;  %242 = vst [vmem:[#allocation2] sm:$0xff] (!%p786_p4), %v1296_v0  ;;  %243 = vst [vmem:[#allocation2 + $0x8] sm:$0xff] (!%p786_p4), %v1296_v0 }
  0x8b   : > { %244 = vst [vmem:[#allocation2 + $0x10] sm:$0xff] (!%p786_p4), %v1296_v0  ;;  %245 = vst [vmem:[#allocation2 + $0x18] sm:$0xff] (!%p786_p4), %v1296_v0 }
  0x8c   : > { %246 = vst [vmem:[#allocation2 + $0x20] sm:$0xff] (!%p786_p4), %v1296_v0  ;;  %247 = vst [vmem:[#allocation2 + $0x28] sm:$0xff] (!%p786_p4), %v1296_v0 }
  0x8d   : > { %248 = vst [vmem:[#allocation2 + $0x30] sm:$0xff] (!%p786_p4), %v1296_v0  ;;  %249 = vst [vmem:[#allocation2 + $0x38] sm:$0xff] (!%p786_p4), %v1296_v0 }
  0x8e   : > { %250 = vst [vmem:[#allocation2 + $0x40] sm:$0xff] (!%p786_p4), %v1296_v0  ;;  %251 = vst [vmem:[#allocation2 + $0x48] sm:$0xff] (!%p786_p4), %v1296_v0 }
  0x8f   : > { %252 = vst [vmem:[#allocation2 + $0x50] sm:$0xff] (!%p786_p4), %v1296_v0  ;;  %253 = vst [vmem:[#allocation2 + $0x58] sm:$0xff] (!%p786_p4), %v1296_v0 }
  0x90   : > { %254 = vst [vmem:[#allocation2 + $0x60] sm:$0xff] (!%p786_p4), %v1296_v0  ;;  %255 = vst [vmem:[#allocation2 + $0x68] sm:$0xff] (!%p786_p4), %v1296_v0 }
  0x91   : > { %256 = vst [vmem:[#allocation2 + $0x70] sm:$0xff] %v1296_v0  ;;  %257 = vst [vmem:[#allocation2 + $0x78] sm:$0xff] %v1296_v0 }
  0x92 PF: > { %v307_v1 = vld [vmem:[%s1615_s12 + $0x8] sm:$0xff]  ;;  %v309_v2 = vld [vmem:[%s1615_s12 + $0x18] sm:$0xff]  ;;  %v306_v3 = vld [vmem:[%s1615_s12] sm:$0xff]  ;;  %s1860_s18 = sld [smem:[#allocation12_spill]] }
  0x93   : > { %v797_v4 = vpack.c.bf16 %v309_v2, %v307_v1  ;;  %v308_v5 = vld [vmem:[%s1615_s12 + $0x10] sm:$0xff]  ;;  %v311_v6 = vld [vmem:[%s1615_s12 + $0x28] sm:$0xff]  ;;  %v313_v7 = vld [vmem:[%s1615_s12 + $0x38] sm:$0xff] }
  0x94   : > { %v799_v8 = vpack.c.bf16 %v308_v5, %v306_v3  ;;  %v801_v9 = vpack.c.bf16 %v313_v7, %v311_v6  ;;  %v310_v10 = vld [vmem:[%s1615_s12 + $0x20] sm:$0xff]  ;;  %v312_v11 = vld [vmem:[%s1615_s12 + $0x30] sm:$0xff]  ;;  %v315_v12 = vld [vmem:[%s1615_s12 + $0x48] sm:$0xff] }
  0x95   : > { %798 = vmatprep.subr.bf16.mxu0 %v797_v4  ;;  %829 = vmatprep.subr.bf16.mxu1 %v797_v4  ;;  %v317_v13 = vld [vmem:[%s1615_s12 + $0x58] sm:$0xff]  ;;  %v803_v14 = vpack.c.bf16 %v312_v11, %v310_v10  ;;  %v275_v16 = vld [vmem:[%s1608_s7 + $0x8] sm:$0xff]  ;;  %v314_v18 = vld [vmem:[%s1615_s12 + $0x40] sm:$0xff] }
  0x96   : > { %800 = vmatpush1.bf16.xpose.msra.mxu0 %v799_v8  ;;  %837 = vmatpush1.bf16.xpose.msra.mxu1 %v799_v8  ;;  %v805_v15 = vpack.c.bf16 %v317_v13, %v315_v12  ;;  %v291_v17 = vld [vmem:[%s1608_s7 + $0x88] sm:$0xff]  ;;  %v316_v19 = vld [vmem:[%s1615_s12 + $0x50] sm:$0xff]  ;;  %v321_v21 = vld [vmem:[%s1615_s12 + $0x78] sm:$0xff] }
  0x97   : > { %802 = vmatprep.subr.bf16.mxu0 %v801_v9  ;;  %830 = vmatprep.subr.bf16.mxu1 %v801_v9  ;;  %v319_v20 = vld [vmem:[%s1615_s12 + $0x68] sm:$0xff]  ;;  %v807_v22 = vpack.c.bf16 %v316_v19, %v314_v18  ;;  %v318_v24 = vld [vmem:[%s1615_s12 + $0x60] sm:$0xff]  ;;  %v320_v25 = vld [vmem:[%s1615_s12 + $0x70] sm:$0xff] }
  0x98   : > { %402 = vmatprep.mubr.f32.mxu0 %v275_v16  ;;  %442 = vmatprep.mubr.f32.mxu1 %v291_v17  ;;  %v809_v23 = vpack.c.bf16 %v321_v21, %v319_v20  ;;  %v323_v26 = vld [vmem:[%s1615_s12 + $0x88] sm:$0xff]  ;;  %v325_v27 = vld [vmem:[%s1615_s12 + $0x98] sm:$0xff]  ;;  %v811_v28 = vpack.c.bf16 %v320_v25, %v318_v24  ;;  %v322_v30 = vld [vmem:[%s1615_s12 + $0x80] sm:$0xff]  ;;  %p787_p12 = scmp.ne.s32.totalorder %s1860_s18, 1 }
  0x99   : > { %v813_v29 = vpack.c.bf16 %v325_v27, %v323_v26  ;;  %v324_v31 = vld [vmem:[%s1615_s12 + $0x90] sm:$0xff]  ;;  %v327_v32 = vld [vmem:[%s1615_s12 + $0xa8] sm:$0xff]  ;;  %v329_v33 = vld [vmem:[%s1615_s12 + $0xb8] sm:$0xff] }
  0x9a   : > { %v815_v34 = vpack.c.bf16 %v324_v31, %v322_v30  ;;  %v817_v35 = vpack.c.bf16 %v329_v33, %v327_v32  ;;  %v326_v36 = vld [vmem:[%s1615_s12 + $0xa0] sm:$0xff]  ;;  %v328_v37 = vld [vmem:[%s1615_s12 + $0xb0] sm:$0xff]  ;;  %v331_v38 = vld [vmem:[%s1615_s12 + $0xc8] sm:$0xff] }
  0x9b   : > { %v333_v39 = vld [vmem:[%s1615_s12 + $0xd8] sm:$0xff]  ;;  %v819_v40 = vpack.c.bf16 %v328_v37, %v326_v36  ;;  %v330_v42 = vld [vmem:[%s1615_s12 + $0xc0] sm:$0xff]  ;;  %v332_v43 = vld [vmem:[%s1615_s12 + $0xd0] sm:$0xff] }
  0x9c   : > { %v821_v41 = vpack.c.bf16 %v333_v39, %v331_v38  ;;  %v335_v44 = vld [vmem:[%s1615_s12 + $0xe8] sm:$0xff]  ;;  %v337_v45 = vld [vmem:[%s1615_s12 + $0xf8] sm:$0xff]  ;;  %v823_v46 = vpack.c.bf16 %v332_v43, %v330_v42  ;;  %v334_v48 = vld [vmem:[%s1615_s12 + $0xe0] sm:$0xff] }
  0x9d   : > { %v825_v47 = vpack.c.bf16 %v337_v45, %v335_v44  ;;  %v336_v49 = vld [vmem:[%s1615_s12 + $0xf0] sm:$0xff]  ;;  %v274_v51 = vld [vmem:[%s1608_s7] sm:$0xff]  ;;  %v277_v53 = vld [vmem:[%s1608_s7 + $0x18] sm:$0xff] }
  0x9e   : > { %804 = vmatpush1.bf16.xpose.msra.mxu0 %v803_v14  ;;  %838 = vmatpush1.bf16.xpose.msra.mxu1 %v803_v14  ;;  %v827_v50 = vpack.c.bf16 %v336_v49, %v334_v48  ;;  %v290_v52 = vld [vmem:[%s1608_s7 + $0x80] sm:$0xff]  ;;  %v293_v54 = vld [vmem:[%s1608_s7 + $0x98] sm:$0xff]  ;;  %v276_v55 = vld [vmem:[%s1608_s7 + $0x10] sm:$0xff] }
  0x9f   : > { %806 = vmatprep.subr.bf16.mxu0 %v805_v15  ;;  %831 = vmatprep.subr.bf16.mxu1 %v805_v15  ;;  %v292_v56 = vld [vmem:[%s1608_s7 + $0x90] sm:$0xff]  ;;  %v279_v57 = vld [vmem:[%s1608_s7 + $0x28] sm:$0xff]  ;;  %v278_v59 = vld [vmem:[%s1608_s7 + $0x20] sm:$0xff] }
  0xa0   : > { %v295_v58 = vld [vmem:[%s1608_s7 + $0xa8] sm:$0xff]  ;;  %v294_v60 = vld [vmem:[%s1608_s7 + $0xa0] sm:$0xff]  ;;  %v281_v61 = vld [vmem:[%s1608_s7 + $0x38] sm:$0xff] }
  0xa1   : > { %v297_v62 = vld [vmem:[%s1608_s7 + $0xb8] sm:$0xff]  ;;  %v280_v63 = vld [vmem:[%s1608_s7 + $0x30] sm:$0xff]  ;;  %v283_v1 = vld [vmem:[%s1608_s7 + $0x48] sm:$0xff] }
  0xa2   : > { %v296_v0 = vld [vmem:[%s1608_s7 + $0xb0] sm:$0xff]  ;;  %v299_v2 = vld [vmem:[%s1608_s7 + $0xc8] sm:$0xff]  ;;  %v282_v3 = vld [vmem:[%s1608_s7 + $0x40] sm:$0xff] }
  0xa3   : > { %v298_v4 = vld [vmem:[%s1608_s7 + $0xc0] sm:$0xff]  ;;  %v285_v5 = vld [vmem:[%s1608_s7 + $0x58] sm:$0xff]  ;;  %v284_v7 = vld [vmem:[%s1608_s7 + $0x50] sm:$0xff] }
  0xa4   : > { %v301_v6 = vld [vmem:[%s1608_s7 + $0xd8] sm:$0xff]  ;;  %v300_v8 = vld [vmem:[%s1608_s7 + $0xd0] sm:$0xff]  ;;  %v287_v9 = vld [vmem:[%s1608_s7 + $0x68] sm:$0xff] }
  0xa5   : > { %v303_v10 = vld [vmem:[%s1608_s7 + $0xe8] sm:$0xff]  ;;  %v286_v11 = vld [vmem:[%s1608_s7 + $0x60] sm:$0xff]  ;;  %v289_v13 = vld [vmem:[%s1608_s7 + $0x78] sm:$0xff] }
  0xa6   : > { %808 = vmatpush1.bf16.xpose.msra.mxu0 %v807_v22  ;;  %839 = vmatpush1.bf16.xpose.msra.mxu1 %v807_v22  ;;  %v302_v12 = vld [vmem:[%s1608_s7 + $0xe0] sm:$0xff]  ;;  %v305_v14 = vld [vmem:[%s1608_s7 + $0xf8] sm:$0xff]  ;;  %v288_v15 = vld [vmem:[%s1608_s7 + $0x70] sm:$0xff] }
  0xa7   : > { %810 = vmatprep.subr.bf16.mxu0 %v809_v23  ;;  %832 = vmatprep.subr.bf16.mxu1 %v809_v23  ;;  %v304_v16 = vld [vmem:[%s1608_s7 + $0xf0] sm:$0xff]  ;;  %v258_v17 = vld [vmem:[#allocation2] sm:$0xff]  ;;  %v259_v25 = vld [vmem:[#allocation2 + $0x8] sm:$0xff] }
  0xa8   : > { %v266_v18 = vld [vmem:[#allocation2 + $0x40] sm:$0xff]  ;;  %v267_v26 = vld [vmem:[#allocation2 + $0x48] sm:$0xff]  ;;  %v260_v33 = vld [vmem:[#allocation2 + $0x10] sm:$0xff] }
  0xa9   : > { %v269_v42 = vld [vmem:[#allocation2 + $0x58] sm:$0xff]  ;;  %v262_v49 = vld [vmem:[#allocation2 + $0x20] sm:$0xff] }
  0xae   : > { %812 = vmatpush1.bf16.xpose.msra.mxu0 %v811_v28  ;;  %840 = vmatpush1.bf16.xpose.msra.mxu1 %v811_v28 }
  0xaf   : > { %814 = vmatprep.subr.bf16.mxu0 %v813_v29  ;;  %833 = vmatprep.subr.bf16.mxu1 %v813_v29 }
  0xb6   : > { %816 = vmatpush1.bf16.xpose.msra.mxu0 %v815_v34  ;;  %841 = vmatpush1.bf16.xpose.msra.mxu1 %v815_v34  ;;  %v268_v34 = vld [vmem:[#allocation2 + $0x50] sm:$0xff] }
  0xb7   : > { %818 = vmatprep.subr.bf16.mxu0 %v817_v35  ;;  %834 = vmatprep.subr.bf16.mxu1 %v817_v35 }
  0xbe   : > { %820 = vmatpush1.bf16.xpose.msra.mxu0 %v819_v40  ;;  %842 = vmatpush1.bf16.xpose.msra.mxu1 %v819_v40 }
  0xbf   : > { %822 = vmatprep.subr.bf16.mxu0 %v821_v41  ;;  %835 = vmatprep.subr.bf16.mxu1 %v821_v41  ;;  %v261_v41 = vld [vmem:[#allocation2 + $0x18] sm:$0xff] }
  0xc6   : > { %824 = vmatpush1.bf16.xpose.msra.mxu0 %v823_v46  ;;  %843 = vmatpush1.bf16.xpose.msra.mxu1 %v823_v46 }
  0xc7   : > { %826 = vmatprep.subr.bf16.mxu0 %v825_v47  ;;  %836 = vmatprep.subr.bf16.mxu1 %v825_v47 }
  0xce   : > { %828 = vmatpush1.bf16.xpose.msra.mxu0 %v827_v50  ;;  %844 = vmatpush1.bf16.xpose.msra.mxu1 %v827_v50  ;;  %v270_v50 = vld [vmem:[#allocation2 + $0x60] sm:$0xff] }
  0xd5   : > { %403 = vmatmul.mubr.f32.vlgmr.msra.gmra.mrb[0].mxu0 %v274_v51  ;;  %443 = vmatmul.mubr.f32.vlgmr.msra.gmra.mrb[0].mxu1 %v290_v52 }
  0xd6   : > { %407 = vmatprep.mubr.f32.mxu0 %v277_v53  ;;  %447 = vmatprep.mubr.f32.mxu1 %v293_v54 }
  0xd9   : > { %408 = vmatmul.mubr.f32.gmra.mrb[2].mxu0 %v276_v55  ;;  %448 = vmatmul.mubr.f32.gmra.mrb[2].mxu1 %v292_v56 }
  0xda   : > { %412 = vmatprep.mubr.f32.mxu0 %v279_v57  ;;  %452 = vmatprep.mubr.f32.mxu1 %v295_v58  ;;  %v263_v57 = vld [vmem:[#allocation2 + $0x28] sm:$0xff] }
  0xdb   : > { %v271_v58 = vld [vmem:[#allocation2 + $0x68] sm:$0xff] }
  0xdd   : > { %413 = vmatmul.mubr.f32.gmra.mrb[4].mxu0 %v278_v59  ;;  %453 = vmatmul.mubr.f32.gmra.mrb[4].mxu1 %v294_v60 }
  0xde   : > { %417 = vmatprep.mubr.f32.mxu0 %v281_v61  ;;  %457 = vmatprep.mubr.f32.mxu1 %v297_v62 }
  0xe1   : > { %418 = vmatmul.mubr.f32.gmra.mrb[6].mxu0 %v280_v63  ;;  %458 = vmatmul.mubr.f32.gmra.mrb[6].mxu1 %v296_v0 }
  0xe2   : > { %422 = vmatprep.mubr.f32.mxu0 %v283_v1  ;;  %462 = vmatprep.mubr.f32.mxu1 %v299_v2  ;;  %v264_v1 = vld [vmem:[#allocation2 + $0x30] sm:$0xff] }
  0xe3   : > { %v272_v2 = vld [vmem:[#allocation2 + $0x70] sm:$0xff] }
  0xe5   : > { %423 = vmatmul.mubr.f32.gmra.mrb[8].mxu0 %v282_v3  ;;  %463 = vmatmul.mubr.f32.gmra.mrb[8].mxu1 %v298_v4 }
  0xe6   : > { %427 = vmatprep.mubr.f32.mxu0 %v285_v5  ;;  %467 = vmatprep.mubr.f32.mxu1 %v301_v6 }
  0xe9   : > { %428 = vmatmul.mubr.f32.gmra.mrb[10].mxu0 %v284_v7  ;;  %468 = vmatmul.mubr.f32.gmra.mrb[10].mxu1 %v300_v8 }
  0xea   : > { %432 = vmatprep.mubr.f32.mxu0 %v287_v9  ;;  %472 = vmatprep.mubr.f32.mxu1 %v303_v10  ;;  %v265_v9 = vld [vmem:[#allocation2 + $0x38] sm:$0xff] }
  0xeb   : > { %v273_v10 = vld [vmem:[#allocation2 + $0x78] sm:$0xff] }
  0xed   : > { %433 = vmatmul.mubr.f32.gmra.mrb[12].mxu0 %v286_v11  ;;  %473 = vmatmul.mubr.f32.gmra.mrb[12].mxu1 %v302_v12 }
  0xee   : > { %437 = vmatprep.mubr.f32.mxu0 %v289_v13  ;;  %477 = vmatprep.mubr.f32.mxu1 %v305_v14 }
  0xf1   : > { %438 = vmatmul.mubr.f32.gmra.mrb[14].mxu0 %v288_v15  ;;  %478 = vmatmul.mubr.f32.gmra.mrb[14].mxu1 %v304_v16 }
 0x1a8   : > { %v404_v19 = vpop.f32.mrb[0].mxu0  ;;  %v444_v20 = vpop.f32.mrb[0].mxu1 }
 0x1a9   : > { %v483_v21 = vadd.f32 %v404_v19, %v258_v17  ;;  %v491_v22 = vadd.f32 %v444_v20, %v266_v18  ;;  %v406_v23 = vpop.f32.mrb[1].mxu0  ;;  %v446_v24 = vpop.f32.mrb[1].mxu1 }
 0x1ab   : > { %499 = vst [vmem:[#allocation2] sm:$0xff] %v483_v21  ;;  %507 = vst [vmem:[#allocation2 + $0x40] sm:$0xff] %v491_v22 }
 0x1ac   : > { %v409_v27 = vpop.f32.mrb[2].mxu0  ;;  %v449_v28 = vpop.f32.mrb[2].mxu1 }
 0x1ad   : > { %v484_v29 = vadd.f32 %v409_v27, %v259_v25  ;;  %v492_v30 = vadd.f32 %v449_v28, %v267_v26  ;;  %v411_v31 = vpop.f32.mrb[3].mxu0  ;;  %v451_v32 = vpop.f32.mrb[3].mxu1 }
 0x1af   : > { %500 = vst [vmem:[#allocation2 + $0x8] sm:$0xff] %v484_v29  ;;  %508 = vst [vmem:[#allocation2 + $0x48] sm:$0xff] %v492_v30 }
 0x1b0   : > { %v414_v35 = vpop.f32.mrb[4].mxu0  ;;  %v454_v36 = vpop.f32.mrb[4].mxu1 }
 0x1b1   : > { %v485_v37 = vadd.f32 %v414_v35, %v260_v33  ;;  %v493_v38 = vadd.f32 %v454_v36, %v268_v34  ;;  %v416_v39 = vpop.f32.mrb[5].mxu0  ;;  %v456_v40 = vpop.f32.mrb[5].mxu1 }
 0x1b2   : > { %v519_v17 = vld [vmem:[#allocation2] sm:$0xff] (!%p787_p12) }
 0x1b3   : > { %501 = vst [vmem:[#allocation2 + $0x10] sm:$0xff] %v485_v37  ;;  %509 = vst [vmem:[#allocation2 + $0x50] sm:$0xff] %v493_v38  ;;  %v535_v20 = vsub.f32 (!%p787_p12), 0.0, %v519_v17  ;;  %v527_v31 = vld [vmem:[#allocation2 + $0x40] sm:$0xff] (!%p787_p12) }
 0x1b4   : > { %v419_v43 = vpop.f32.mrb[6].mxu0  ;;  %v459_v44 = vpop.f32.mrb[6].mxu1  ;;  %v543_v39 = vsub.f32 (!%p787_p12), 0.0, %v527_v31 }
 0x1b5   : > { %v486_v45 = vadd.f32 %v419_v43, %v261_v41  ;;  %v494_v46 = vadd.f32 %v459_v44, %v269_v42  ;;  %v421_v47 = vpop.f32.mrb[7].mxu0  ;;  %v461_v48 = vpop.f32.mrb[7].mxu1  ;;  %v551_v32 = vmul.f32 (!%p787_p12), 1.442695, %v535_v20 }
 0x1b6   : > { %v520_v18 = vld [vmem:[#allocation2 + $0x8] sm:$0xff] (!%p787_p12) }
 0x1b7   : > { %502 = vst [vmem:[#allocation2 + $0x18] sm:$0xff] %v486_v45  ;;  %510 = vst [vmem:[#allocation2 + $0x58] sm:$0xff] %v494_v46  ;;  %v536_v21 = vsub.f32 (!%p787_p12), 0.0, %v520_v18  ;;  %999 = vpow2.f32 (!%p787_p12), %v551_v32  ;;  %v528_v40 = vld [vmem:[#allocation2 + $0x48] sm:$0xff] (!%p787_p12) }
 0x1b8   : > { %v424_v51 = vpop.f32.mrb[8].mxu0  ;;  %v464_v52 = vpop.f32.mrb[8].mxu1  ;;  %v544_v44 = vsub.f32 (!%p787_p12), 0.0, %v528_v40 }
 0x1b9   : > { %v487_v53 = vadd.f32 %v424_v51, %v262_v49  ;;  %v495_v54 = vadd.f32 %v464_v52, %v270_v50  ;;  %v426_v55 = vpop.f32.mrb[9].mxu0  ;;  %v466_v56 = vpop.f32.mrb[9].mxu1  ;;  %v553_v33 = vmul.f32 (!%p787_p12), 1.442695, %v536_v21  ;;  %v567_v50 = vmul.f32 (!%p787_p12), 1.442695, %v543_v39 }
 0x1ba   : > { %v521_v19 = vld [vmem:[#allocation2 + $0x10] sm:$0xff] (!%p787_p12)  ;;  %v569_v52 = vmul.f32 (!%p787_p12), 1.442695, %v544_v44 }
 0x1bb   : > { %503 = vst [vmem:[#allocation2 + $0x20] sm:$0xff] %v487_v53  ;;  %511 = vst [vmem:[#allocation2 + $0x60] sm:$0xff] %v495_v54  ;;  %v537_v22 = vsub.f32 (!%p787_p12), 0.0, %v521_v19  ;;  %v529_v41 = vld [vmem:[#allocation2 + $0x50] sm:$0xff] (!%p787_p12)  ;;  %1001 = vpow2.f32 (!%p787_p12), %v553_v33 }
 0x1bc   : > { %v429_v59 = vpop.f32.mrb[10].mxu0  ;;  %v469_v60 = vpop.f32.mrb[10].mxu1  ;;  %v545_v47 = vsub.f32 (!%p787_p12), 0.0, %v529_v41 }
 0x1bd   : > { %v488_v61 = vadd.f32 %v429_v59, %v263_v57  ;;  %v496_v62 = vadd.f32 %v469_v60, %v271_v58  ;;  %v431_v63 = vpop.f32.mrb[11].mxu0  ;;  %v471_v0 = vpop.f32.mrb[11].mxu1  ;;  %v555_v34 = vmul.f32 (!%p787_p12), 1.442695, %v537_v22 }
 0x1be   : > { %v522_v23 = vld [vmem:[#allocation2 + $0x18] sm:$0xff] (!%p787_p12)  ;;  %v571_v53 = vmul.f32 (!%p787_p12), 1.442695, %v545_v47 }
 0x1bf   : > { %504 = vst [vmem:[#allocation2 + $0x28] sm:$0xff] %v488_v61  ;;  %512 = vst [vmem:[#allocation2 + $0x68] sm:$0xff] %v496_v62  ;;  %v538_v26 = vsub.f32 (!%p787_p12), 0.0, %v522_v23  ;;  %v530_v42 = vld [vmem:[#allocation2 + $0x58] sm:$0xff] (!%p787_p12)  ;;  %1003 = vpow2.f32 (!%p787_p12), %v555_v34 }
 0x1c0   : > { %v434_v3 = vpop.f32.mrb[12].mxu0  ;;  %v474_v4 = vpop.f32.mrb[12].mxu1  ;;  %v546_v49 = vsub.f32 (!%p787_p12), 0.0, %v530_v42 }
 0x1c1   : > { %v489_v5 = vadd.f32 %v434_v3, %v264_v1  ;;  %v497_v6 = vadd.f32 %v474_v4, %v272_v2  ;;  %v436_v7 = vpop.f32.mrb[13].mxu0  ;;  %v476_v8 = vpop.f32.mrb[13].mxu1  ;;  %518 = sbr.rel (%p787_p12) target bundleno = 513 (0x201), region = 44  ;;  %v557_v35 = vmul.f32 (!%p787_p12), 1.442695, %v538_v26 }
 0x1c2   : > { %v523_v24 = vld [vmem:[#allocation2 + $0x20] sm:$0xff] (!%p787_p12)  ;;  %v573_v54 = vmul.f32 (!%p787_p12), 1.442695, %v546_v49  ;;  %v1000_v56 = vpop.eup (!%p787_p12), %999 }
 0x1c3   : > { %505 = vst [vmem:[#allocation2 + $0x30] sm:$0xff] %v489_v5  ;;  %513 = vst [vmem:[#allocation2 + $0x70] sm:$0xff] %v497_v6  ;;  %v539_v27 = vsub.f32 (!%p787_p12), 0.0, %v523_v24  ;;  %v531_v45 = vld [vmem:[#allocation2 + $0x60] sm:$0xff] (!%p787_p12)  ;;  %1005 = vpow2.f32 (!%p787_p12), %v557_v35  ;;  %v583_v58 = vadd.f32 (!%p787_p12), 1.0, %v1000_v56 }
 0x1c4   : > { %v439_v11 = vpop.f32.mrb[14].mxu0  ;;  %v479_v12 = vpop.f32.mrb[14].mxu1  ;;  %v547_v51 = vsub.f32 (!%p787_p12), 0.0, %v531_v45 }
 0x1c5   : > { %v490_v13 = vadd.f32 %v439_v11, %v265_v9  ;;  %v498_v14 = vadd.f32 %v479_v12, %v273_v10  ;;  %v441_v15 = vpop.f32.mrb[15].mxu0  ;;  %v481_v16 = vpop.f32.mrb[15].mxu1  ;;  %v559_v36 = vmul.f32 (!%p787_p12), 1.442695, %v539_v27 }
 0x1c6   : > { %v524_v25 = vld [vmem:[#allocation2 + $0x28] sm:$0xff] (!%p787_p12)  ;;  %v575_v55 = vmul.f32 (!%p787_p12), 1.442695, %v547_v51  ;;  %v1002_v57 = vpop.eup (!%p787_p12), %1001 }
 0x1c7   : > { %506 = vst [vmem:[#allocation2 + $0x38] sm:$0xff] %v490_v13  ;;  %514 = vst [vmem:[#allocation2 + $0x78] sm:$0xff] %v498_v14  ;;  %v540_v28 = vsub.f32 (!%p787_p12), 0.0, %v524_v25  ;;  %1007 = vpow2.f32 (!%p787_p12), %v559_v36  ;;  %v584_v60 = vadd.f32 (!%p787_p12), 1.0, %v1002_v57  ;;  %v532_v3 = vld [vmem:[#allocation2 + $0x68] sm:$0xff] (!%p787_p12) }
 0x1c8   : > { %v548_v12 = vsub.f32 0.0, %v532_v3 }
 0x1c9   : > { %v561_v43 = vmul.f32 1.442695, %v540_v28  ;;  %v1004_v59 = vpop.eup %1003 }
 0x1ca   : > { %v525_v29 = vld [vmem:[#allocation2 + $0x30] sm:$0xff]  ;;  %v585_v62 = vadd.f32 1.0, %v1004_v59  ;;  %v577_v23 = vmul.f32 1.442695, %v548_v12 }
 0x1cb   : > { %v541_v37 = vsub.f32 0.0, %v525_v29  ;;  %1009 = vpow2.f32 %v561_v43  ;;  %v533_v6 = vld [vmem:[#allocation2 + $0x70] sm:$0xff] }
 0x1cc   : > { %v549_v15 = vsub.f32 0.0, %v533_v6 }
 0x1cd   : > { %v563_v46 = vmul.f32 1.442695, %v541_v37  ;;  %v1006_v61 = vpop.eup %1005 }
 0x1ce   : > { %v526_v30 = vld [vmem:[#allocation2 + $0x38] sm:$0xff]  ;;  %v586_v0 = vadd.f32 1.0, %v1006_v61  ;;  %v579_v26 = vmul.f32 1.442695, %v549_v15 }
 0x1cf   : > { %v542_v38 = vsub.f32 0.0, %v526_v30  ;;  %1011 = vpow2.f32 %v563_v46  ;;  %v534_v9 = vld [vmem:[#allocation2 + $0x78] sm:$0xff] }
 0x1d0   : > { %v550_v18 = vsub.f32 0.0, %v534_v9 }
 0x1d1   : > { %v565_v48 = vmul.f32 1.442695, %v542_v38  ;;  %v1008_v63 = vpop.eup %1007 }
 0x1d2   : > { %v587_v2 = vadd.f32 1.0, %v1008_v63  ;;  %v581_v28 = vmul.f32 1.442695, %v550_v18 }
 0x1d3   : > { %1013 = vpow2.f32 %v565_v48 }
 0x1d4   : > { %1015 = vpow2.f32 %v567_v50 }
 0x1d5   : > { %1017 = vpow2.f32 %v569_v52  ;;  %v1010_v1 = vpop.eup %1009 }
 0x1d6   : > { %1019 = vpow2.f32 %v571_v53  ;;  %v588_v5 = vadd.f32 1.0, %v1010_v1 }
 0x1d7   : > { %1021 = vpow2.f32 %v573_v54 }
 0x1d8   : > { %1023 = vpow2.f32 %v575_v55 }
 0x1d9   : > { %1025 = vrcp.f32 %v583_v58  ;;  %v1012_v4 = vpop.eup %1011 }
 0x1da   : > { %1027 = vrcp.f32 %v584_v60  ;;  %v589_v8 = vadd.f32 1.0, %v1012_v4 }
 0x1db   : > { %1029 = vrcp.f32 %v585_v62 }
 0x1dc   : > { %1031 = vrcp.f32 %v586_v0 }
 0x1dd   : > { %v1014_v7 = vpop.eup %1013  ;;  %1033 = vrcp.f32 %v587_v2 }
 0x1de   : > { %v1016_v10 = vpop.eup %1015  ;;  %1035 = vrcp.f32 %v588_v5  ;;  %v590_v11 = vadd.f32 1.0, %v1014_v7 }
 0x1df   : > { %v1018_v13 = vpop.eup %1017  ;;  %1037 = vrcp.f32 %v589_v8  ;;  %v591_v14 = vadd.f32 1.0, %v1016_v10 }
 0x1e0   : > { %v1020_v16 = vpop.eup %1019  ;;  %1039 = vrcp.f32 %v590_v11  ;;  %v592_v17 = vadd.f32 1.0, %v1018_v13 }
 0x1e1   : > { %v1022_v19 = vpop.eup %1021  ;;  %1041 = vrcp.f32 %v591_v14  ;;  %v593_v20 = vadd.f32 1.0, %v1020_v16 }
 0x1e2   : > { %v1024_v21 = vpop.eup %1023  ;;  %1043 = vrcp.f32 %v592_v17  ;;  %v594_v22 = vadd.f32 1.0, %v1022_v19 }
 0x1e3   : > { %v1026_v24 = vpop.eup %1025  ;;  %1045 = vrcp.f32 %v593_v20  ;;  %v595_v25 = vadd.f32 1.0, %v1024_v21 }
 0x1e4   : > { %v1028_v27 = vpop.eup %1027  ;;  %615 = vst [vmem:[%s1624_s28] sm:$0xff] %v1026_v24  ;;  %1047 = vrcp.f32 %v594_v22 }
 0x1e5   : > { %v1030_v29 = vpop.eup %1029  ;;  %616 = vst [vmem:[%s1624_s28 + $0x8] sm:$0xff] %v1028_v27  ;;  %1049 = vrcp.f32 %v595_v25 }
 0x1e6   : > { %v1032_v30 = vpop.eup %1031  ;;  %617 = vst [vmem:[%s1624_s28 + $0x10] sm:$0xff] %v1030_v29  ;;  %1051 = vpow2.f32 %v577_v23 }
 0x1e7   : > { %v1034_v31 = vpop.eup %1033  ;;  %618 = vst [vmem:[%s1624_s28 + $0x18] sm:$0xff] %v1032_v30  ;;  %1053 = vpow2.f32 %v579_v26 }
 0x1e8   : > { %v1036_v32 = vpop.eup %1035  ;;  %619 = vst [vmem:[%s1624_s28 + $0x20] sm:$0xff] %v1034_v31  ;;  %1055 = vpow2.f32 %v581_v28 }
 0x1e9   : > { %v1038_v33 = vpop.eup %1037  ;;  %620 = vst [vmem:[%s1624_s28 + $0x28] sm:$0xff] %v1036_v32 }
 0x1ea   : > { %v1040_v34 = vpop.eup %1039  ;;  %621 = vst [vmem:[%s1624_s28 + $0x30] sm:$0xff] %v1038_v33 }
 0x1eb   : > { %v1042_v35 = vpop.eup %1041  ;;  %622 = vst [vmem:[%s1624_s28 + $0x38] sm:$0xff] %v1040_v34 }
 0x1ec   : > { %v1044_v36 = vpop.eup %1043  ;;  %623 = vst [vmem:[%s1624_s28 + $0x40] sm:$0xff] %v1042_v35 }
 0x1ed   : > { %v1046_v37 = vpop.eup %1045  ;;  %624 = vst [vmem:[%s1624_s28 + $0x48] sm:$0xff] %v1044_v36 }
 0x1ee   : > { %v1048_v38 = vpop.eup %1047  ;;  %625 = vst [vmem:[%s1624_s28 + $0x50] sm:$0xff] %v1046_v37 }
 0x1ef   : > { %v1050_v39 = vpop.eup %1049  ;;  %626 = vst [vmem:[%s1624_s28 + $0x58] sm:$0xff] %v1048_v38 }
 0x1f0   : > { %v1052_v40 = vpop.eup %1051  ;;  %627 = vst [vmem:[%s1624_s28 + $0x60] sm:$0xff] %v1050_v39 }
 0x1f1   : > { %v1054_v41 = vpop.eup %1053  ;;  %v596_v42 = vadd.f32 1.0, %v1052_v40 }
 0x1f2   : > { %v1056_v43 = vpop.eup %1055  ;;  %v597_v44 = vadd.f32 1.0, %v1054_v41 }
 0x1f3   : > { %1057 = vrcp.f32 %v596_v42  ;;  %v598_v45 = vadd.f32 1.0, %v1056_v43 }
 0x1f4   : > { %1059 = vrcp.f32 %v597_v44 }
 0x1f5   : > { %1061 = vrcp.f32 %v598_v45 }
 0x1fd   : > { %v1058_v46 = vpop.eup %1057 }
 0x1fe   : > { %v1060_v47 = vpop.eup %1059  ;;  %628 = vst [vmem:[%s1624_s28 + $0x68] sm:$0xff] %v1058_v46 }
 0x1ff   : > { %v1062_v48 = vpop.eup %1061  ;;  %629 = vst [vmem:[%s1624_s28 + $0x70] sm:$0xff] %v1060_v47 }
 0x200   : > { %630 = vst [vmem:[%s1624_s28 + $0x78] sm:$0xff] %v1062_v48 }
 0x201 PF: > { %s1861_s30 = sld [smem:[#allocation14_spill]]  ;;  %s1862_s27 = sld [smem:[#allocation13_spill]] }
 0x202   : > { %s647_s5 = sshll.u32 %s1624_s28, 4  ;;  %s1863_s3 = sld [smem:[#allocation21_spill]]  ;;  %s1711_s5 = int_to_ptr.vmem [resolvable:$true] %s647_s5 }
 0x203   : > { %s1720_s25 = scalar_lea.sflag [#allocation5], %s230_s8  ;;  %s1123_s26 = scalar_lea.vmem %s1711_s5, 2048 }
 0x204   : > { %p1124_p13 = scmp.ne.s32.totalorder %s1711_s5, %s1123_s26  ;;  %p1864_p5 = scmp.ne.s32.totalorder %s1847_s2, 0 }
 0x205   : > { %s1297_s28 = smov [#allocation8]  }
 0x206   : > { %p1125_p6 = pnand %p1124_p13, %p1864_p5  ;;  %s1127_s18 = sshll.u32 %s1297_s28, 4  ;;  %s1128_s18 = int_to_ptr.vmem [resolvable:$false] %s1127_s18 }
 0x207   : > { %s796_s29 = sshll.u32 %s1861_s30, 5  ;;  %s1129_s30 = scalar_lea.vmem %s1128_s18, 4096 }
 0x208   : > { %s644_s4 = sadd.s32 %s1862_s27, %s796_s29  ;;  %p1126_p9 = pneg %p1125_p6 }
 0x209   : > { %s791_s7 = sshll.u32 %s644_s4, 7  ;;  %p1130_p0 = scmp.lt.s32.totalorder %s1711_s5, %s1128_s18 }
 0x20a   : > { %s1716_s12 = scalar_lea.hbm %s1863_s3, %s791_s7  ;;  %p1131_p3 = scmp.lt.s32.totalorder %s1129_s30, %s1123_s26 }
 0x20c   : > { %p1132_p2 = por %p1131_p3, %p1130_p0 }
 0x20e   : > { %p1133_p1 = pnand %p1132_p2, %p1126_p9 }
 0x210   : > { %1136 = shalt.err (!%p1133_p1)
}
 0x211   : > { %s1137_s8 = scalar_lea.hbm %s1716_s12, 2048  ;;  %s1141_s4 = scalar_lea.hbm %s1863_s3, 8192 }
 0x212   : > { %p1138_p8 = scmp.ne.s32.totalorder %s1716_s12, %s1137_s8  ;;  %p1142_p7 = scmp.lt.u32.totalorder %s1716_s12, %s1863_s3 }
 0x213   : > { %p1143_p4 = scmp.lt.u32.totalorder %s1141_s4, %s1137_s8  ;;  %p1145_p13 = scmp.lt.u32.totalorder %s1137_s8, %s1716_s12 }
 0x214   : > { %p1139_p10 = pnand %p1138_p8, %p1864_p5 }
 0x215   : > { %p1144_p12 = por %p1143_p4, %p1142_p7 }
 0x216   : > { %p1140_p11 = pneg %p1139_p10 }
 0x217   : > { %p1146_p6 = por %p1145_p13, %p1144_p12 }
 0x219   : > { %p1147_p9 = pnand %p1146_p6, %p1140_p11 }
 0x21b   : > { %1150 = shalt.err (!%p1147_p9)
}
 0x21c   : > { %s1298_s23 = smov 128   ;;  %s1299_s26 = smov 256  }
 0x21d   : > { %s1300_s28 = smov 8  }
 0x21e   : > { %849 = dma.vmem_to_hbm [thread:$0]  (%p1864_p5), %s1711_s5, 2048, %s1716_s12, %s1720_s25, %s1298_s23, %s1299_s26, %s1300_s28  }
 0x21f PF: > { %p863_p0 = scmp.ge.s32.totalorder %s1289_s24, 2  ;;  %s662_s18 = sand.u32 1, %s1229_s9  }
 0x220   : > { %p1865_p3 = scmp.ne.s32.totalorder %s1849_s19, 0  ;;  %s663_s30 = scalar_lea.sflag [#allocation5], %s662_s18 }
 0x222   : > { %p859_p2 = pnand %p863_p0, %p1865_p3 }
 0x224   : > { %1224 = dma.done.wait (!%p859_p2), %s663_s30, 2048  }
 0x225   : > { %1226 = vsyncadd (!%p859_p2), %s663_s30, 4294965248  ;;  %s21_s24 = sadd.s32 1, %s1289_s24   ;;  %s1867_s2 = smov %s1546_s15 }
 0x226   : > { %p1749_p1 = scmp.ge.s32.totalorder %s21_s24, 10   ;;  %s1868_s5 = sld [smem:[#allocation15_spill]] }
 0x227   : > { %s1869_s25 = sld [smem:[#allocation16_spill]]  ;;  %s1870_s27 = sld [smem:[#allocation18_spill]] }
 0x228   : > { %s1871_s23 = sld [smem:[#allocation19_spill]]  ;;  %s1872_s9 = smov %s1233_s10 }
 0x229   : > { %s1873_s10 = smov %s1237_s11  ;;  %s1874_s11 = smov %s1549_s0 }
 0x22a   : > { %s1875_s12 = smov %s1245_s13  ;;  %s1876_s13 = smov %s1249_s14 }
 0x22b   : > { %s1877_s14 = smov %s1530_s20  ;;  %s1878_s15 = smov %s1257_s16 }
 0x22c   : > { %s1879_s16 = smov %s1261_s17  ;;  %s1880_s17 = smov %s1867_s2 }
 0x22d   : > { %s1881_s18 = smov %s1277_s21  ;;  %s1882_s19 = smov %s1281_s22 }
 0x22e   : > { %s1883_s20 = smov %s1868_s5  ;;  %s1884_s21 = smov %s1869_s25 }
 0x22f   : > { %s1885_s22 = smov %s1870_s27  ;;  %20 = sbr.rel (!%p1749_p1) target bundleno = 16 (0x10), region = 94 }
 0x236   :  { %668 = vsyncpa [#allocation4], 1 }
 0x237   :  { %670 = vsyncpa [#allocation4 + $0x1], 1 }
 0x238   :  { %671 = vsyncpa [#allocation7], 1 }
 0x239   :  { %673 = vsyncpa [#allocation7 + $0x1], 1 }
 0x23a   :  { %674 = vsyncpa [#allocation5], 1 }
 0x23b   :  { %676 = vsyncpa [#allocation5 + $0x1], 1 }

</bundles_post_ra>
